<compile_context>
chip_gen: v6e
topology: v6e:2x2x1
jax: 0.10.0
libtpu: 0.0.40
codegen_flags: <defaults>
</compile_context>

<pallas_src>
import functools

import jax
import jax.numpy as jnp
from jax import lax
from jax.experimental import pallas as pl
from jax.experimental.pallas import tpu as pltpu

EPS = 1e-5
NEG_SLOPE = 0.2
BLOCK_BUDGET = 4 * 1024 * 1024     # target bytes per elementwise / output block
MAX_COUT_TILE = 512                # cap on the conv output-channel tile


def _default_vmem_limit() -> int:
    """Generation-aware scoped-VMEM cap: ~3/4 of physical per-core VMEM
    (=> <=96 MiB on v5e/v6e's 128 MiB, <=48 MiB on v7x's 64 MiB)."""
    try:
        cap = int(pltpu.get_tpu_info().vmem_capacity_bytes)
    except Exception:                       # query unavailable -> v7x-safe
        cap = 64 * 1024 * 1024
    return max(32 * 1024 * 1024, min((cap * 3) // 4, 96 * 1024 * 1024))


VMEM_LIMIT = _default_vmem_limit()


def _largest_aligned_divisor(dim: int, max_tile: int, align: int = 8) -> int:
    """Largest divisor of `dim` that is <= max_tile and a multiple of `align`
    (or the full dim when it already fits)."""
    if dim <= max_tile:
        return dim
    t = (max_tile // align) * align
    while t >= align:
        if dim % t == 0:
            return t
        t -= align
    # TODO(synk): dims with no multiple-of-8 divisor fall back to the full dim,
    # which may exceed the block budget for very large inputs.
    return dim


def _lane_roll(x, d: int, L: int):
    """Returns xs with xs[:, l] == x[:, (l + d) % L] (lane rotation)."""
    if d % L == 0:
        return x
    shift = (-d) % L
    if L % 128 == 0:
        # XLU rotate: frees the load/store and VALU slots vs. concatenate.
        return pltpu.roll(x, shift=shift, axis=x.ndim - 1)
    # Fallback for non-128-multiple lane extents.
    return jnp.concatenate([x[:, L - shift:], x[:, :L - shift]], axis=1)


def _make_tap_masks(H: int, W: int, K: int, pad: int, dtype=jnp.float32):
    """(K*K, 1, H*W) float masks: 1.0 where tap (kh,kw) reads inside the image."""
    L = H * W
    lane = jnp.arange(L, dtype=jnp.int32)
    hh = lane // W
    ww = lane % W
    masks = []
    for kh in range(K):
        for kw in range(K):
            dh, dw = kh - pad, kw - pad
            valid = ((hh >= -dh) & (hh < H - dh) &
                     (ww >= -dw) & (ww < W - dw))
            masks.append(valid.astype(dtype))
    return jnp.stack(masks).reshape(K * K, 1, L)


# ---------------------------------------------------------------------------
# Fused conv stage:
#   [optional prologue: y = LeakyReLU(scale*x + shift)  (folded BatchNorm)]
#   conv2d "same" via im2col + single MXU matmul
#   epilogue: per-channel sum and sum-of-squares of the raw conv output
# Grid = (batch, cout_tiles); the im2col operand is built once per batch
# element (inner grid index == 0) into a VMEM scratch and reused.
# ---------------------------------------------------------------------------
def _conv_stage_kernel(*refs, K, W, L, pad, apply_prologue, compute_dtype):
    if apply_prologue:
        (x_ref, w_ref, masks_ref, scale_ref, shift_ref,
         y_ref, sum_ref, ssq_ref, cols_ref) = refs
    else:
        (x_ref, w_ref, masks_ref,
         y_ref, sum_ref, ssq_ref, cols_ref) = refs
        scale_ref = shift_ref = None

    j = pl.program_id(1)

    @pl.when(j == 0)
    def _build_cols():
        x = x_ref[0].astype(jnp.float32)                    # (Cin, L)
        if apply_prologue:
            # Folded BatchNorm of the previous layer + LeakyReLU(0.2).
            z = x * scale_ref[...] + shift_ref[...]
            x = jnp.maximum(z, NEG_SLOPE * z)
        pieces = []
        for kh in range(K):
            for kw in range(K):
                tap = kh * K + kw
                d = (kh - pad) * W + (kw - pad)
                xs = _lane_roll(x, d, L)
                if d != 0:
                    xs = xs * masks_ref[tap]                # precomputed (1, L)
                pieces.append(xs)
        cols_ref[...] = jnp.concatenate(pieces, axis=0).astype(cols_ref.dtype)

    w = w_ref[...].astype(compute_dtype)                    # (tco, K*K*Cin)
    cols = cols_ref[...].astype(compute_dtype)              # (K*K*Cin, L)
    acc = jnp.dot(w, cols, preferred_element_type=jnp.float32)   # (tco, L)

    y_ref[...] = acc[None].astype(y_ref.dtype)
    # BatchNorm statistics of the *raw* conv output (single pass).
    sum_ref[...] = jnp.sum(acc, axis=-1, keepdims=True)[None]
    ssq_ref[...] = jnp.sum(acc * acc, axis=-1, keepdims=True)[None]


def conv2d_bn_stage(x3, w, masks, H, W, prologue=None, *,
                    compute_dtype=jnp.float32, out_dtype=None):
    """x3: (N, Cin, H*W); w: (Cout, Cin, K, K) PyTorch OIHW weights.
    prologue: optional (scale, shift) per-input-channel folded BN (+LeakyReLU)
    applied to x before the convolution.
    Returns (y, ch_sum, ch_sumsq) with y = conv(x'), stats over the lane axis
    per batch element (combine over batch outside).
    `compute_dtype=jnp.bfloat16` trades precision for MXU throughput on v6e/v7x."""
    N, Cin, L = x3.shape
    Cout, Cin_w, K, K2 = w.shape
    assert Cin_w == Cin and K == K2 and L == H * W
    pad = (K - 1) // 2
    out_dtype = out_dtype or x3.dtype

    # (Cout, Cin, K, K) -> (Cout, K*K*Cin), column tap*Cin + c == w[o, c, kh, kw]
    # (matches the row order of the im2col operand built in-kernel).
    w_flat = jnp.transpose(w, (0, 2, 3, 1)).reshape(Cout, K * K * Cin)

    max_tco = max(8, min(MAX_COUT_TILE,
                         BLOCK_BUDGET // max(1, L * jnp.dtype(out_dtype).itemsize)))
    tco = _largest_aligned_divisor(Cout, max_tco)
    n_j = Cout // tco
    # TODO(synk): for very large H*W or Cin, additionally tile the lane axis
    # (halo of pad*W+pad) so the (K*K*Cin, L_tile) scratch stays within VMEM.

    in_specs = [
        pl.BlockSpec((1, Cin, L), lambda n, j: (n, 0, 0)),
        pl.BlockSpec((tco, K * K * Cin), lambda n, j: (j, 0)),
        pl.BlockSpec((K * K, 1, L), lambda n, j: (0, 0, 0)),
    ]
    args = [x3, w_flat, masks]
    apply_prologue = prologue is not None
    if apply_prologue:
        scale, shift = prologue
        in_specs += [pl.BlockSpec((Cin, 1), lambda n, j: (0, 0)),
                     pl.BlockSpec((Cin, 1), lambda n, j: (0, 0))]
        args += [scale.reshape(Cin, 1).astype(jnp.float32),
                 shift.reshape(Cin, 1).astype(jnp.float32)]

    kernel = functools.partial(
        _conv_stage_kernel, K=K, W=W, L=L, pad=pad,
        apply_prologue=apply_prologue, compute_dtype=compute_dtype)

    y, s, q = pl.pallas_call(
        kernel,
        out_shape=(jax.ShapeDtypeStruct((N, Cout, L), out_dtype),
                   jax.ShapeDtypeStruct((N, Cout, 1), jnp.float32),
                   jax.ShapeDtypeStruct((N, Cout, 1), jnp.float32)),
        grid=(N, n_j),
        in_specs=in_specs,
        out_specs=(pl.BlockSpec((1, tco, L), lambda n, j: (n, j, 0)),
                   pl.BlockSpec((1, tco, 1), lambda n, j: (n, j, 0)),
                   pl.BlockSpec((1, tco, 1), lambda n, j: (n, j, 0))),
        scratch_shapes=[pltpu.VMEM((K * K * Cin, L), compute_dtype)],
        compiler_params=pltpu.CompilerParams(
            dimension_semantics=("parallel", "arbitrary"),
            vmem_limit_bytes=VMEM_LIMIT),
    )(*args)
    return y, s, q


def _fold_bn_params(sums, ssqs, gamma, beta, count):
    """Combine per-batch-element channel stats into folded BN scale/shift
    (training-mode batch statistics, biased variance)."""
    s = jnp.sum(sums, axis=0).reshape(-1)            # (C,)
    q = jnp.sum(ssqs, axis=0).reshape(-1)
    mean = s / count
    var = jnp.maximum(q / count - mean * mean, 0.0)
    inv_std = lax.rsqrt(var + EPS)
    scale = gamma.astype(jnp.float32) * inv_std
    shift = beta.astype(jnp.float32) - mean * scale
    return scale, shift


# ---------------------------------------------------------------------------
# Final folded BatchNorm + LeakyReLU(0.2) apply (for the second BN, whose
# output is the block output and therefore cannot be folded into a next conv).
# ---------------------------------------------------------------------------
def _bn_act_kernel(x_ref, scale_ref, shift_ref, o_ref):
    z = x_ref[...].astype(jnp.float32) * scale_ref[...] + shift_ref[...]
    o_ref[...] = jnp.maximum(z, NEG_SLOPE * z).astype(o_ref.dtype)


def bn_leaky_relu_apply(x3, scale, shift, *, out_dtype=None):
    N, C, L = x3.shape
    out_dtype = out_dtype or x3.dtype
    per_chan = L * x3.dtype.itemsize
    tc = _largest_aligned_divisor(C, max(1, BLOCK_BUDGET // max(1, per_chan)))
    s3 = scale.reshape(1, C, 1).astype(jnp.float32)
    b3 = shift.reshape(1, C, 1).astype(jnp.float32)
    return pl.pallas_call(
        _bn_act_kernel,
        out_shape=jax.ShapeDtypeStruct((N, C, L), out_dtype),
        grid=(N, C // tc),
        in_specs=[pl.BlockSpec((1, tc, L), lambda n, c: (n, c, 0)),
                  pl.BlockSpec((1, tc, 1), lambda n, c: (0, c, 0)),
                  pl.BlockSpec((1, tc, 1), lambda n, c: (0, c, 0))],
        out_specs=pl.BlockSpec((1, tc, L), lambda n, c: (n, c, 0)),
        compiler_params=pltpu.CompilerParams(
            dimension_semantics=("parallel", "parallel"),
            vmem_limit_bytes=VMEM_LIMIT),
    )(x3, s3, b3)


# ---------------------------------------------------------------------------
# Full ConvBlock_general forward.
# ---------------------------------------------------------------------------
def conv_block_general(x, w1, gamma1, beta1, w2, gamma2, beta2,
                       *, kernel_size, padding, stride, drop_prob,
                       compute_dtype=jnp.float32):
    """Forward of ConvBlock_general: (N, in_chans, H, W) -> (N, out_chans, H, W).

    BatchNorm2d uses training-mode batch statistics; running-stat updates are
    a training side effect and are not produced."""
    if stride != 1 or kernel_size != 2 * padding + 1:
        # TODO(synk): general stride / non-"same" padding not implemented
        # (output spatial size would change per layer).
        raise NotImplementedError("only stride=1, 'same' padding is supported")
    # Dropout2d: identity here (example uses drop_prob=0.0).
    # TODO(synk): stochastic training-mode Dropout2d (whole-channel masks) is
    # not reproduced; with drop_prob > 0 this matches eval-mode dropout.
    del drop_prob

    N, Cin, H, W = x.shape
    L = H * W
    Cout = w1.shape[0]
    x3 = x.reshape(N, Cin, L)        # free, contiguous reshape (lane-dense L)
    masks = _make_tap_masks(H, W, kernel_size, padding)
    count = float(N * L)

    # Stage 1: conv1, emit BN1 statistics in the epilogue.
    y1, s1, q1 = conv2d_bn_stage(x3, w1, masks, H, W, prologue=None,
                                 compute_dtype=compute_dtype)
    sc1, sh1 = _fold_bn_params(s1, q1, gamma1, beta1, count)

    # Stage 2: BN1+LeakyReLU applied as the prologue of conv2; emit BN2 stats.
    y2, s2, q2 = conv2d_bn_stage(y1, w2, masks, H, W, prologue=(sc1, sh1),
                                 compute_dtype=compute_dtype)
    sc2, sh2 = _fold_bn_params(s2, q2, gamma2, beta2, count)

    # Stage 3: final BN2 + LeakyReLU apply.
    out = bn_leaky_relu_apply(y2, sc2, sh2)
    return out.reshape(N, Cout, H, W)


if __name__ == "__main__":
    key = jax.random.PRNGKey(0)
    k1, k2, k3, k4, k5 = jax.random.split(key, 5)

    N, Cin, Cout, H, W = 2, 4, 4, 16, 16
    K, PAD, STRIDE, DROP = 3, 1, 1, 0.0

    x = jax.random.normal(k1, (N, Cin, H, W), dtype=jnp.float32)
    w1 = 0.1 * jax.random.normal(k2, (Cout, Cin, K, K), dtype=jnp.float32)
    w2 = 0.1 * jax.random.normal(k3, (Cout, Cout, K, K), dtype=jnp.float32)
    gamma1 = 1.0 + 0.1 * jax.random.normal(k4, (Cout,), dtype=jnp.float32)
    beta1 = 0.1 * jax.random.normal(k5, (Cout,), dtype=jnp.float32)
    gamma2 = jnp.ones((Cout,), dtype=jnp.float32)   # PyTorch BN init
    beta2 = jnp.zeros((Cout,), dtype=jnp.float32)

    out = conv_block_general(x, w1, gamma1, beta1, w2, gamma2, beta2,
                             kernel_size=K, padding=PAD, stride=STRIDE,
                             drop_prob=DROP)
    out = jax.block_until_ready(out)

    # --- pure-JAX reference of the same forward (sanity check) ---
    def ref_conv(z, w):
        return lax.conv_general_dilated(
            z, w, window_strides=(STRIDE, STRIDE),
            padding=((PAD, PAD), (PAD, PAD)),
            dimension_numbers=("NCHW", "OIHW", "NCHW"),
            precision=lax.Precision.HIGHEST)

    def ref_bn_lrelu(z, g, b):
        mean = jnp.mean(z, axis=(0, 2, 3), keepdims=True)
        var = jnp.mean((z - mean) ** 2, axis=(0, 2, 3), keepdims=True)
        y = ((z - mean) / jnp.sqrt(var + EPS) * g.reshape(1, -1, 1, 1)
             + b.reshape(1, -1, 1, 1))
        return jnp.where(y >= 0, y, NEG_SLOPE * y)

    ref = ref_bn_lrelu(ref_conv(x, w1), gamma1, beta1)
    ref = ref_bn_lrelu(ref_conv(ref, w2), gamma2, beta2)

    assert out.shape == (N, Cout, H, W)
    max_err = float(jnp.max(jnp.abs(out - ref)))
    assert jnp.allclose(out, ref, atol=2e-2, rtol=2e-2), (
        f"mismatch vs reference, max abs err = {max_err}")

    print("KERNEL_OK")
</pallas_src>

<mosaic_0001>
module attributes {stable_mosaic.version = 11 : i64} {
  func.func @_conv_stage_kernel(%arg0: i32, %arg1: i32, %arg2: memref<1x4x256xf32, #tpu.memory_space<vmem>>, %arg3: memref<4x36xf32, #tpu.memory_space<vmem>>, %arg4: memref<9x1x256xf32, #tpu.memory_space<vmem>>, %arg5: memref<1x4x256xf32, #tpu.memory_space<vmem>>, %arg6: memref<1x4x1xf32, #tpu.memory_space<vmem>>, %arg7: memref<1x4x1xf32, #tpu.memory_space<vmem>>, %arg8: memref<36x256xf32, #tpu.memory_space<vmem>>) attributes {dimension_semantics = [#tpu.dimension_semantics<parallel>, #tpu.dimension_semantics<arbitrary>], iteration_bounds = array<i64: 2, 1>, scalar_prefetch = 0 : i64, scratch_operands = 1 : i64, tpu.core_type = #tpu.core_type<tc>, window_params = [{transform_indices = @transform_0, window_bounds = array<i64: 1, 4, 256>}, {transform_indices = @transform_1, window_bounds = array<i64: 4, 36>}, {pipeline_mode = #tpu.pipeline_mode<synchronous>, transform_indices = @transform_2, window_bounds = array<i64: 9, 1, 256>}, {transform_indices = @transform_3, window_bounds = array<i64: 1, 4, 256>}, {transform_indices = @transform_4, window_bounds = array<i64: 1, 4, 1>}, {transform_indices = @transform_5, window_bounds = array<i64: 1, 4, 1>}]} {
    %c0_i32 = arith.constant 0 : i32
    %0 = arith.cmpi eq, %arg1, %c0_i32 : i32
    %1 = arith.extui %0 : i1 to i32
    %c0_i32_0 = arith.constant 0 : i32
    %2 = arith.cmpi ne, %1, %c0_i32_0 : i32
    scf.if %2 {
      %c0_15 = arith.constant 0 : index
      %c0_16 = arith.constant 0 : index
      %c0_17 = arith.constant 0 : index
      %17 = vector.load %arg2[%c0_15, %c0_16, %c0_17] : memref<1x4x256xf32, #tpu.memory_space<vmem>>, vector<1x4x256xf32>
      %18 = vector.shape_cast %17 : vector<1x4x256xf32> to vector<4x256xf32>
      %c17_i32 = arith.constant 17 : i32
      %19 = tpu.dynamic_rotate %18 by %c17_i32 dim 1 : vector<4x256xf32>, i32 -> vector<4x256xf32>
      %c0_18 = arith.constant 0 : index
      %c0_19 = arith.constant 0 : index
      %c0_20 = arith.constant 0 : index
      %20 = vector.load %arg4[%c0_18, %c0_19, %c0_20] : memref<9x1x256xf32, #tpu.memory_space<vmem>>, vector<1x1x256xf32>
      %21 = vector.shape_cast %20 : vector<1x1x256xf32> to vector<1x256xf32>
      %22 = vector.broadcast %21 : vector<1x256xf32> to vector<4x256xf32>
      %23 = arith.mulf %19, %22 : vector<4x256xf32>
      %c16_i32 = arith.constant 16 : i32
      %24 = tpu.dynamic_rotate %18 by %c16_i32 dim 1 : vector<4x256xf32>, i32 -> vector<4x256xf32>
      %c1 = arith.constant 1 : index
      %c0_21 = arith.constant 0 : index
      %c0_22 = arith.constant 0 : index
      %25 = vector.load %arg4[%c1, %c0_21, %c0_22] : memref<9x1x256xf32, #tpu.memory_space<vmem>>, vector<1x1x256xf32>
      %26 = vector.shape_cast %25 : vector<1x1x256xf32> to vector<1x256xf32>
      %27 = vector.broadcast %26 : vector<1x256xf32> to vector<4x256xf32>
      %28 = arith.mulf %24, %27 : vector<4x256xf32>
      %c15_i32 = arith.constant 15 : i32
      %29 = tpu.dynamic_rotate %18 by %c15_i32 dim 1 : vector<4x256xf32>, i32 -> vector<4x256xf32>
      %c2 = arith.constant 2 : index
      %c0_23 = arith.constant 0 : index
      %c0_24 = arith.constant 0 : index
      %30 = vector.load %arg4[%c2, %c0_23, %c0_24] : memref<9x1x256xf32, #tpu.memory_space<vmem>>, vector<1x1x256xf32>
      %31 = vector.shape_cast %30 : vector<1x1x256xf32> to vector<1x256xf32>
      %32 = vector.broadcast %31 : vector<1x256xf32> to vector<4x256xf32>
      %33 = arith.mulf %29, %32 : vector<4x256xf32>
      %c1_i32 = arith.constant 1 : i32
      %34 = tpu.dynamic_rotate %18 by %c1_i32 dim 1 : vector<4x256xf32>, i32 -> vector<4x256xf32>
      %c3 = arith.constant 3 : index
      %c0_25 = arith.constant 0 : index
      %c0_26 = arith.constant 0 : index
      %35 = vector.load %arg4[%c3, %c0_25, %c0_26] : memref<9x1x256xf32, #tpu.memory_space<vmem>>, vector<1x1x256xf32>
      %36 = vector.shape_cast %35 : vector<1x1x256xf32> to vector<1x256xf32>
      %37 = vector.broadcast %36 : vector<1x256xf32> to vector<4x256xf32>
      %38 = arith.mulf %34, %37 : vector<4x256xf32>
      %c255_i32 = arith.constant 255 : i32
      %39 = tpu.dynamic_rotate %18 by %c255_i32 dim 1 : vector<4x256xf32>, i32 -> vector<4x256xf32>
      %c5 = arith.constant 5 : index
      %c0_27 = arith.constant 0 : index
      %c0_28 = arith.constant 0 : index
      %40 = vector.load %arg4[%c5, %c0_27, %c0_28] : memref<9x1x256xf32, #tpu.memory_space<vmem>>, vector<1x1x256xf32>
      %41 = vector.shape_cast %40 : vector<1x1x256xf32> to vector<1x256xf32>
      %42 = vector.broadcast %41 : vector<1x256xf32> to vector<4x256xf32>
      %43 = arith.mulf %39, %42 : vector<4x256xf32>
      %c241_i32 = arith.constant 241 : i32
      %44 = tpu.dynamic_rotate %18 by %c241_i32 dim 1 : vector<4x256xf32>, i32 -> vector<4x256xf32>
      %c6 = arith.constant 6 : index
      %c0_29 = arith.constant 0 : index
      %c0_30 = arith.constant 0 : index
      %45 = vector.load %arg4[%c6, %c0_29, %c0_30] : memref<9x1x256xf32, #tpu.memory_space<vmem>>, vector<1x1x256xf32>
      %46 = vector.shape_cast %45 : vector<1x1x256xf32> to vector<1x256xf32>
      %47 = vector.broadcast %46 : vector<1x256xf32> to vector<4x256xf32>
      %48 = arith.mulf %44, %47 : vector<4x256xf32>
      %c240_i32 = arith.constant 240 : i32
      %49 = tpu.dynamic_rotate %18 by %c240_i32 dim 1 : vector<4x256xf32>, i32 -> vector<4x256xf32>
      %c7 = arith.constant 7 : index
      %c0_31 = arith.constant 0 : index
      %c0_32 = arith.constant 0 : index
      %50 = vector.load %arg4[%c7, %c0_31, %c0_32] : memref<9x1x256xf32, #tpu.memory_space<vmem>>, vector<1x1x256xf32>
      %51 = vector.shape_cast %50 : vector<1x1x256xf32> to vector<1x256xf32>
      %52 = vector.broadcast %51 : vector<1x256xf32> to vector<4x256xf32>
      %53 = arith.mulf %49, %52 : vector<4x256xf32>
      %c239_i32 = arith.constant 239 : i32
      %54 = tpu.dynamic_rotate %18 by %c239_i32 dim 1 : vector<4x256xf32>, i32 -> vector<4x256xf32>
      %c8 = arith.constant 8 : index
      %c0_33 = arith.constant 0 : index
      %c0_34 = arith.constant 0 : index
      %55 = vector.load %arg4[%c8, %c0_33, %c0_34] : memref<9x1x256xf32, #tpu.memory_space<vmem>>, vector<1x1x256xf32>
      %56 = vector.shape_cast %55 : vector<1x1x256xf32> to vector<1x256xf32>
      %57 = vector.broadcast %56 : vector<1x256xf32> to vector<4x256xf32>
      %58 = arith.mulf %54, %57 : vector<4x256xf32>
      %59 = tpu.concatenate %23, %28, %33, %38, %18, %43, %48, %53, %58 in 0 : vector<4x256xf32>, vector<4x256xf32>, vector<4x256xf32>, vector<4x256xf32>, vector<4x256xf32>, vector<4x256xf32>, vector<4x256xf32>, vector<4x256xf32>, vector<4x256xf32> -> vector<36x256xf32>
      %c0_35 = arith.constant 0 : index
      %c0_36 = arith.constant 0 : index
      %60 = vector.load %arg8[%c0_35, %c0_36] : memref<36x256xf32, #tpu.memory_space<vmem>>, vector<36x256xf32>
      tpu.vector_store %arg8[%c0_35, %c0_36], %59 {strides = array<i32>} : memref<36x256xf32, #tpu.memory_space<vmem>>, vector<36x256xf32>,
    } else {
    }
    %c0 = arith.constant 0 : index
    %c0_1 = arith.constant 0 : index
    %3 = vector.load %arg3[%c0, %c0_1] : memref<4x36xf32, #tpu.memory_space<vmem>>, vector<4x36xf32>
    %c0_2 = arith.constant 0 : index
    %c0_3 = arith.constant 0 : index
    %4 = vector.load %arg8[%c0_2, %c0_3] : memref<36x256xf32, #tpu.memory_space<vmem>>, vector<36x256xf32>
    %cst = arith.constant dense<0.000000e+00> : vector<4x256xf32>
    %5 = tpu.matmul %3, %4, %cst {dimension_numbers = #tpu.dot_dimension_numbers<[1], [0], [0], [1], [0, 0, 1, 1], [], []>} : vector<4x36xf32>, vector<36x256xf32>, vector<4x256xf32> -> vector<4x256xf32>
    %6 = vector.shape_cast %5 : vector<4x256xf32> to vector<1x4x256xf32>
    %c0_4 = arith.constant 0 : index
    %c0_5 = arith.constant 0 : index
    %c0_6 = arith.constant 0 : index
    %7 = vector.load %arg5[%c0_4, %c0_5, %c0_6] : memref<1x4x256xf32, #tpu.memory_space<vmem>>, vector<1x4x256xf32>
    tpu.vector_store %arg5[%c0_4, %c0_5, %c0_6], %6 {strides = array<i32>} : memref<1x4x256xf32, #tpu.memory_space<vmem>>, vector<1x4x256xf32>,
    %cst_7 = arith.constant dense<0.000000e+00> : vector<4xf32>
    %8 = vector.multi_reduction <add>, %5, %cst_7 [1] : vector<4x256xf32> to vector<4xf32>
    %9 = vector.shape_cast %8 : vector<4xf32> to vector<4x1xf32>
    %10 = vector.shape_cast %9 : vector<4x1xf32> to vector<1x4x1xf32>
    %c0_8 = arith.constant 0 : index
    %c0_9 = arith.constant 0 : index
    %c0_10 = arith.constant 0 : index
    %11 = vector.load %arg6[%c0_8, %c0_9, %c0_10] : memref<1x4x1xf32, #tpu.memory_space<vmem>>, vector<1x4x1xf32>
    tpu.vector_store %arg6[%c0_8, %c0_9, %c0_10], %10 {strides = array<i32>} : memref<1x4x1xf32, #tpu.memory_space<vmem>>, vector<1x4x1xf32>,
    %12 = arith.mulf %5, %5 : vector<4x256xf32>
    %cst_11 = arith.constant dense<0.000000e+00> : vector<4xf32>
    %13 = vector.multi_reduction <add>, %12, %cst_11 [1] : vector<4x256xf32> to vector<4xf32>
    %14 = vector.shape_cast %13 : vector<4xf32> to vector<4x1xf32>
    %15 = vector.shape_cast %14 : vector<4x1xf32> to vector<1x4x1xf32>
    %c0_12 = arith.constant 0 : index
    %c0_13 = arith.constant 0 : index
    %c0_14 = arith.constant 0 : index
    %16 = vector.load %arg7[%c0_12, %c0_13, %c0_14] : memref<1x4x1xf32, #tpu.memory_space<vmem>>, vector<1x4x1xf32>
    tpu.vector_store %arg7[%c0_12, %c0_13, %c0_14], %15 {strides = array<i32>} : memref<1x4x1xf32, #tpu.memory_space<vmem>>, vector<1x4x1xf32>,
    return
  }
  func.func @transform_0(%arg0: i32, %arg1: i32) -> (i32, i32, i32) {
    %c0_i32 = arith.constant 0 : i32
    %c0_i32_0 = arith.constant 0 : i32
    %c0_i32_1 = arith.constant 0 : i32
    return %arg0, %c0_i32, %c0_i32_0 : i32, i32, i32
  }
  func.func @transform_1(%arg0: i32, %arg1: i32) -> (i32, i32) {
    %c0_i32 = arith.constant 0 : i32
    %c0_i32_0 = arith.constant 0 : i32
    return %arg1, %c0_i32 : i32, i32
  }
  func.func @transform_2(%arg0: i32, %arg1: i32) -> (i32, i32, i32) {
    %c0_i32 = arith.constant 0 : i32
    %c0_i32_0 = arith.constant 0 : i32
    %c0_i32_1 = arith.constant 0 : i32
    %c0_i32_2 = arith.constant 0 : i32
    return %c0_i32, %c0_i32_0, %c0_i32_1 : i32, i32, i32
  }
  func.func @transform_3(%arg0: i32, %arg1: i32) -> (i32, i32, i32) {
    %c0_i32 = arith.constant 0 : i32
    %c0_i32_0 = arith.constant 0 : i32
    return %arg0, %arg1, %c0_i32 : i32, i32, i32
  }
  func.func @transform_4(%arg0: i32, %arg1: i32) -> (i32, i32, i32) {
    %c0_i32 = arith.constant 0 : i32
    %c0_i32_0 = arith.constant 0 : i32
    return %arg0, %arg1, %c0_i32 : i32, i32, i32
  }
  func.func @transform_5(%arg0: i32, %arg1: i32) -> (i32, i32, i32) {
    %c0_i32 = arith.constant 0 : i32
    %c0_i32_0 = arith.constant 0 : i32
    return %arg0, %arg1, %c0_i32 : i32, i32, i32
  }
}

</mosaic_0001>

<bundles_post_ra>
// kernel: tpu_custom_call.1
= control target key start
LH: loop header
LB: loop body
LE: loop exit
PB: predicated region body
PF: predicated region fallthrough
CT: control target
= control target key end

     0   :  { %s1470_s0 = inlined_call_operand.hbm [shape: f32[2,4,256], index: 0, kind: input, shape index: {}]   ;;  %s1471_s1 = inlined_call_operand.hbm [shape: f32[4,36], index: 1, kind: input, shape index: {}]   ;;  %s1472_s2 = inlined_call_operand.hbm [shape: f32[9,1,256], index: 2, kind: input, shape index: {}]   ;;  %s1473_s3 = inlined_call_operand.hbm [shape: f32[2,4,256], index: 3, kind: output, shape index: {0}]   ;;  %s1474_s4 = inlined_call_operand.vmem [shape: f32[2,4,1], index: 4, kind: output, shape index: {1}]   ;;  %s1475_s5 = inlined_call_operand.vmem [shape: f32[2,4,1], index: 5, kind: output, shape index: {2}]  }
   0x1   :  { %1480 = sst [smem:[#allocation13_spill]] %s1471_s1 }
   0x2   :  { %11 = vsyncpa [#allocation4], 0 }
   0x3   :  { %13 = vsyncpa [#allocation4 + $0x1], 0 }
   0x4   :  { %14 = vsyncpa [#allocation7], 0 }
   0x5   :  { %15 = vsyncpa [#allocation5], 0 }
   0x6   :  { %17 = vsyncpa [#allocation5 + $0x1], 0  ;;  %s1200_s18 = smov 0   ;;  %s1202_s19 = smov 0  }
   0x7   :  { %s1204_s20 = smov 0   ;;  %s1206_s21 = smov 0  }
   0x8   :  { %s1208_s22 = smov 0   ;;  %s1210_s23 = smov 0  }
   0x9 LB: > { %s868_s24 = sadd.s32 4294967295, %s1153_s23   ;;  %s869_s25 = sadd.s32 4294967294, %s1153_s23   ;;  %s1153_s23 = sphi %s1210_s23, %s23_s23   ;;  %s1149_s22 = sphi %s1208_s22, %s1500_s22   ;;  %s1145_s21 = sphi %s1206_s21, %s1499_s21   ;;  %s1141_s20 = sphi %s1204_s20, %s1498_s20   ;;  %s1137_s19 = sphi %s1202_s19, %s1497_s19   ;;  %s1133_s18 = sphi %s1200_s18, %s1496_s18  }
   0xa   : > { %p55_p0 = scmp.ne.s32.totalorder %s1137_s19, %s1133_s18  ;;  %p1234_p1 = scmp.eq.s32.totalorder %s868_s24, 0 }
   0xb   : > { %p1238_p2 = scmp.eq.s32.totalorder %s868_s24, 1  ;;  %p134_p3 = scmp.eq.s32.totalorder %s869_s25, 1 }
   0xc   : > { %s1481_s26 = scalar_select %p1234_p1, 1, 0 }
   0xd   : > { %s1482_s27 = scalar_select %p1238_p2, 1, 0 }
   0xe   : > { %p1244_p4 = por %p1234_p1, %p55_p0  ;;  %p870_p5 = scmp.ge.s32.totalorder %s1153_s23, 1 }
   0xf   : > { %p1249_p6 = por %p134_p3, %p55_p0  ;;  %p197_p7 = scmp.lt.s32.totalorder %s1153_s23, 3 }
  0x10   : > { %s1483_s28 = scalar_select %p1244_p4, 1, 0 }
  0x11   : > { %s1484_s29 = scalar_select %p1249_p6, 1, 0 }
  0x12   : > { %p1254_p8 = pnand %p870_p5, %p197_p7  ;;  %s1155_s6 = smov [#allocation6]  }
  0x13   : > { %s212_s7 = sshll.u32 %s1155_s6, 4  ;;  %s1156_s8 = smov [#allocation8]   ;;  %s213_s7 = int_to_ptr.vmem [resolvable:$true] %s212_s7 }
  0x14   : > { %s1485_s30 = scalar_select %p1254_p8, 1, 0 }
  0x15   : > { %p906_p10 = pneg %p1254_p8  ;;  %s222_s9 = sshll.u32 %s1156_s8, 4  ;;  %s223_s9 = int_to_ptr.vmem [resolvable:$true] %s222_s9 }
  0x16   : > { %s1000_s11 = scalar_lea.vmem %s213_s7, 64  ;;  %p1008_p5 = scmp.lt.s32.totalorder %s213_s7, %s213_s7 }
  0x17   : > { %p1263_p11 = pnand %p906_p10, %p1234_p1  ;;  %p1001_p13 = scmp.ne.s32.totalorder %s213_s7, %s1000_s11 }
  0x18   : > { %p1009_p7 = scmp.lt.s32.totalorder %s1000_s11, %s1000_s11 }
  0x19   : > { %p991_p12 = pneg %p1263_p11 }
  0x1a   : > { %p1010_p9 = por %p1009_p7, %p1008_p5 }
  0x1b   : > { %p1003_p0 = pnand %p1001_p13, %p991_p12 }
  0x1d   : > { %p1004_p3 = pneg %p1003_p0 }
  0x1f   : > { %p1011_p6 = pnand %p1010_p9, %p1004_p3 }
  0x21   : > { %1014 = shalt.err (!%p1011_p6)
}
  0x22   : > { %s1487_s1 = sld [smem:[#allocation13_spill]]  ;;  %s1026_s14 = scalar_lea.vmem %s223_s9, 288 }
  0x23   : > { %p1027_p10 = scmp.ne.s32.totalorder %s223_s9, %s1026_s14  ;;  %p1034_p13 = scmp.lt.s32.totalorder %s223_s9, %s223_s9 }
  0x24   : > { %p1035_p0 = scmp.lt.s32.totalorder %s1026_s14, %s1026_s14 }
  0x25   : > { %p1029_p1 = pnand %p1027_p10, %p991_p12 }
  0x26   : > { %p1036_p8 = por %p1035_p0, %p1034_p13 }
  0x27   : > { %p1030_p4 = pneg %p1029_p1 }
  0x28   : > { %909 = dma.hbm_to_vmem [thread:$0]  (!%p1263_p11), %s1487_s1, 64, %s213_s7, [#allocation7]  }
  0x29   : > { %p1037_p2 = pnand %p1036_p8, %p1030_p4 }
  0x2b   : > { %1040 = shalt.err (!%p1037_p2)
}
  0x2c   : > { %s1157_s15 = smov 32   ;;  %s1158_s16 = smov 2  }
  0x2d   : > { %912 = dma.hbm_to_vmem [thread:$0]  (!%p1263_p11), %s1472_s2, 288, %s223_s9, [#allocation7], %s1157_s15, %s1157_s15, %s1158_s16  }
  0x2e   : > { %s35_s25 = sadd.s32 1, %s1149_s22  ;;  %s42_s6 = sadd.s32 1, %s1141_s20 }
  0x2f   : > { %p37_p1 = scmp.ge.s32.totalorder %s35_s25, 2  ;;  %p49_p2 = scmp.ne.s32.totalorder %s1141_s20, %s1137_s19 }
  0x30   : > { %p50_p4 = scmp.eq.s32.totalorder %s1153_s23, 0  ;;  %p923_p6 = scmp.lt.s32.totalorder %s1153_s23, 2 }
  0x31   : > { %s1502_s25 = smov (%p37_p1, %s35_s25), 0  ;;  %p1488_p9 = scmp.ne.s32.totalorder %s1482_s27, 0 }
  0x32   : > { %p51_p8 = por %p50_p4, %p49_p2  ;;  %s39_s8 = ssub.s32 %s1149_s22, %s1502_s25 }
  0x33   : > { %p1295_p12 = por %p1488_p9, %p49_p2  ;;  %s236_s10 = sand.u32 1, %s1141_s20  }
  0x34   : > { %p40_p3 = scmp.eq.s32.totalorder %s39_s8, 0  ;;  %s874_s9 = sshll.u32 %s236_s10, 3 }
  0x35   : > { %s892_s11 = sshll.u32 %s1149_s22, 7  ;;  %s240_s16 = scalar_lea.vmem [#allocation3], %s874_s9 }
  0x36   : > { %s1304_s12 = scalar_select %p40_p3, %s1141_s20, %s42_s6  }
  0x37   : > { %s246_s15 = scalar_lea.hbm %s1470_s0, %s892_s11  ;;  %s248_s17 = sshll.u32 %s240_s16, 4  ;;  %s249_s17 = int_to_ptr.vmem [resolvable:$true] %s248_s17 }
  0x38   : > { %p1311_p11 = pnand %p923_p6, %p51_p8  ;;  %s237_s24 = scalar_lea.sflag [#allocation4], %s236_s10 }
  0x39   : > { %s1054_s8 = scalar_lea.vmem %s249_s17, 128  ;;  %s1159_s6 = smov [#allocation3]  }
  0x3a   : > { %p1043_p5 = pneg %p1311_p11  ;;  %p1055_p7 = scmp.ne.s32.totalorder %s249_s17, %s1054_s8 }
  0x3b   : > { %s1059_s1 = sshll.u32 %s1159_s6, 4  ;;  %s1060_s1 = int_to_ptr.vmem [resolvable:$false] %s1059_s1 }
  0x3c   : > { %p1057_p10 = pnand %p1055_p7, %p1043_p5  ;;  %s1061_s11 = scalar_lea.vmem %s1060_s1, 256 }
  0x3d   : > { %p1062_p0 = scmp.lt.s32.totalorder %s249_s17, %s1060_s1  ;;  %p1063_p1 = scmp.lt.s32.totalorder %s1061_s11, %s1054_s8 }
  0x3e   : > { %p1058_p13 = pneg %p1057_p10 }
  0x3f   : > { %p1064_p2 = por %p1063_p1, %p1062_p0 }
  0x41   : > { %p1065_p4 = pnand %p1064_p2, %p1058_p13 }
  0x43   : > { %1068 = shalt.err (!%p1065_p4)
}
  0x44   : > { %916 = dma.hbm_to_vmem [thread:$0]  (!%p1311_p11), %s246_s15, 128, %s249_s17, %s237_s24  }
  0x45   : > { %p1491_p6 = scmp.ne.s32.totalorder %s1485_s30, 0 }
  0x46   : > { %s1322_s10 = sand.u32 (!%p1491_p6), 1, %s1137_s19   ;;  %p1492_p8 = scmp.ne.s32.totalorder (!%p1491_p6), %s1483_s28, 0 }
  0x47   : > { %257 = sbr.rel (%p1491_p6) target bundleno = 569 (0x239), region = 32  ;;  %s878_s9 = sshll.u32 (!%p1491_p6), %s1322_s10, 3 }
  0x48   : > { %s260_s13 = scalar_lea.sflag (!%p1491_p6), [#allocation4], %s1322_s10  ;;  %s263_s1 = scalar_lea.vmem (!%p1491_p6), [#allocation3], %s878_s9 }
  0x4c   : > { %1120 = dma.done.wait (%p1492_p8), %s260_s13, 128  }
  0x4d   : > { %1122 = vsyncadd (%p1492_p8), %s260_s13, 4294967168  ;;  %p1493_p9 = scmp.ne.s32.totalorder %s1481_s26, 0 }
  0x4f   : > { %1124 = dma.done.wait (%p1493_p9), [#allocation7], 352  }
  0x50   : > { %1126 = vsyncadd (%p1493_p9), [#allocation7], 4294966944  ;;  %v1336_v0 = vld [vmem:[%s263_s1] sm:$0xff]  ;;  %s1160_s30 = smov 111   ;;  %s1161_s14 = smov 112   ;;  %v1166_v2 = vmov 0.0   ;;  %v338_v3 = vlaneseq }
  0x51   : > { %489 = vrot.lane.b32.xlu1 %v1336_v0, %s1160_s30  ;;  %467 = vrot.lane.b32.xlu0 %v1336_v0, %s1161_s14  ;;  %v1342_v1 = vcombine.high %v1336_v0, %v1336_v0  ;;  %s1162_s28 = smov 127   ;;  %s1163_s26 = smov 113   ;;  %v497_v8 = vld [vmem:[#allocation8 + $0x10] sm:$0x3]  ;;  %v431_v13 = vld [vmem:[#allocation8 + $0xa] sm:$0x3] }
  0x52   : > { %s1164_s15 = smov 1   ;;  %s1165_s16 = smov 16   ;;  %640 = vmatprep.mubr.f32.mxu0 %v1166_v2  ;;  %v346_v4 = vshrl.u32 %v338_v3, 7  ;;  %v1358_v5 = vand.u32 127, %v338_v3  ;;  %v475_v14 = vld [vmem:[#allocation8 + $0xe] sm:$0x3] }
  0x53   : > { %s1167_s17 = smov 15   ;;  %s1168_s27 = smov 17   ;;  %v453_v21 = vld [vmem:[#allocation8 + $0xc] sm:$0x3]  ;;  %vm535_vm4 = vcmask 1043456   ;;  %vm565_vm9 = vcmask 293888  }
  0x54   : > { %v1360_v6 = vsub.s32 0, %v346_v4  ;;  %v1362_v7 = vsub.s32 1, %v346_v4  ;;  %vm493_vm0 = vcmp.lt.s32.totalorder %v1358_v5, 111  ;;  %vm427_vm1 = vcmp.lt.s32.totalorder %v1358_v5, 127  ;;  %v409_v50 = vld [vmem:[#allocation8 + $0x6] sm:$0x3] }
  0x55   : > { %423 = vrot.lane.b32.xlu0 %v1336_v0, %s1162_s28  ;;  %491 = vrot.lane.b32.xlu1 %v1342_v1, %s1160_s30  ;;  %vm471_vm2 = vcmp.lt.s32.totalorder %v1358_v5, 112  ;;  %vm449_vm3 = vcmp.lt.s32.totalorder %v1358_v5, 113  ;;  %vm405_vm5 = vcmp.lt.s32.totalorder %v1358_v5, 1  ;;  %v365_v61 = vld [vmem:[#allocation8 + $0x2] sm:$0x3]  ;;  %vm361_vm6 = vcmp.lt.s32.totalorder %v1358_v5, 16 }
  0x56   : > { %v502_v11 = vrot.slane %v497_v8, %v1360_v6  ;;  %v506_v12 = vrot.slane %v497_v8, %v1362_v7  ;;  %v436_v19 = vrot.slane %v431_v13, %v1360_v6  ;;  %v440_v20 = vrot.slane %v431_v13, %v1362_v7  ;;  %v387_v62 = vld [vmem:[#allocation8 + $0x4] sm:$0x3]  ;;  %v343_v4 = vld [vmem:[#allocation8] sm:$0x3]  ;;  %s293_s24 = scalar_lea.vmem [#allocation9], %s878_s9  ;;  %s893_s8 = sshll.u32 %s1145_s21, 7 }
  0x57   : > { %v480_v24 = vrot.slane %v475_v14, %v1360_v6  ;;  %v484_v25 = vrot.slane %v475_v14, %v1362_v7  ;;  %v458_v28 = vrot.slane %v453_v21, %v1360_v6  ;;  %v462_v29 = vrot.slane %v453_v21, %v1362_v7  ;;  %s696_s13 = scalar_lea.hbm %s1473_s3, %s893_s8  ;;  %s698_s1 = sshll.u32 %s293_s24, 4  ;;  %s699_s1 = int_to_ptr.vmem [resolvable:$true] %s698_s1 }
  0x58   : > { %v414_v57 = vrot.slane %v409_v50, %v1360_v6  ;;  %v418_v58 = vrot.slane %v409_v50, %v1362_v7  ;;  %v370_v3 = vrot.slane %v365_v61, %v1360_v6  ;;  %v374_v8 = vrot.slane %v365_v61, %v1362_v7  ;;  %s668_s30 = scalar_lea.sflag [#allocation5], %s1322_s10 }
  0x59   : > { %425 = vrot.lane.b32.xlu1 %v1342_v1, %s1162_s28  ;;  %469 = vrot.lane.b32.xlu0 %v1342_v1, %s1161_s14  ;;  %vm383_vm7 = vcmp.lt.s32.totalorder %v1358_v5, 15  ;;  %vm340_vm8 = vcmp.lt.s32.totalorder %v1358_v5, 17  ;;  %s1069_s14 = scalar_lea.vmem %s699_s1, 128  ;;  %s1169_s28 = smov [#allocation9]  }
  0x5a   : > { %p1070_p3 = scmp.ne.s32.totalorder %s699_s1, %s1069_s14 }
  0x5c   : > { %p1071_p11 = pnand %p1070_p3, %p1295_p12 }
  0x5d   : > { %447 = vrot.lane.b32.xlu1 %v1342_v1, %s1163_s26  ;;  %445 = vrot.lane.b32.xlu0 %v1336_v0, %s1163_s26  ;;  %s1073_s26 = sshll.u32 %s1169_s28, 4  ;;  %s1074_s26 = int_to_ptr.vmem [resolvable:$false] %s1073_s26 }
  0x5e   : > { %p1072_p5 = pneg %p1071_p11  ;;  %s1075_s9 = scalar_lea.vmem %s1074_s26, 256 }
  0x5f   : > { %p1076_p7 = scmp.lt.s32.totalorder %s699_s1, %s1074_s26  ;;  %p1077_p10 = scmp.lt.s32.totalorder %s1075_s9, %s1069_s14 }
  0x61   : > { %403 = vrot.lane.b32.xlu1 %v1342_v1, %s1164_s15  ;;  %401 = vrot.lane.b32.xlu0 %v1336_v0, %s1164_s15  ;;  %p1078_p13 = por %p1077_p10, %p1076_p7 }
  0x63   : > { %p1079_p0 = pnand %p1078_p13, %p1072_p5 }
  0x65   : > { %359 = vrot.lane.b32.xlu1 %v1342_v1, %s1165_s16  ;;  %357 = vrot.lane.b32.xlu0 %v1336_v0, %s1165_s16 }
  0x69   : > { %381 = vrot.lane.b32.xlu1 %v1342_v1, %s1167_s17  ;;  %379 = vrot.lane.b32.xlu0 %v1336_v0, %s1167_s17 }
  0x6d   : > { %336 = vrot.lane.b32.xlu1 %v1342_v1, %s1168_s27  ;;  %334 = vrot.lane.b32.xlu0 %v1336_v0, %s1168_s27 }
  0xc3   : > { %v490_v9 = vpop.permute.xlu1 %489  ;;  %v468_v10 = vpop.permute.xlu0 %467 }
  0xc7   : > { %v424_v15 = vpop.permute.xlu0 %423  ;;  %v492_v16 = vpop.permute.xlu1 %491 }
  0xc8   : > { %v494_v17 = vsel %vm493_vm0, %v490_v9, %v492_v16  ;;  %v495_v18 = vsel %vm493_vm0, %v492_v16, %v490_v9  ;;  %v392_v9 = vrot.slane %v387_v62, %v1360_v6  ;;  %v352_v16 = vrot.slane %v343_v4, %v1362_v7 }
  0xc9   : > { %v509_v22 = vmul.f32 %v502_v11, %v494_v17  ;;  %v510_v23 = vmul.f32 %v506_v12, %v495_v18 }
  0xcb   : > { %552 = vst [vmem:[#allocation2 + $0x40] sm:$0xf] %v509_v22  ;;  %553 = vst [vmem:[#allocation2 + $0x38] sm:$0xf] %v510_v23  ;;  %v426_v26 = vpop.permute.xlu1 %425  ;;  %v470_v27 = vpop.permute.xlu0 %469 }
  0xcc   : > { %v428_v30 = vsel %vm427_vm1, %v424_v15, %v426_v26  ;;  %v429_v31 = vsel %vm427_vm1, %v426_v26, %v424_v15  ;;  %v472_v32 = vsel %vm471_vm2, %v468_v10, %v470_v27  ;;  %v473_v33 = vsel %vm471_vm2, %v470_v27, %v468_v10 }
  0xcd   : > { %v443_v34 = vmul.f32 %v436_v19, %v428_v30  ;;  %v444_v35 = vmul.f32 %v440_v20, %v429_v31  ;;  %v487_v36 = vmul.f32 %v480_v24, %v472_v32  ;;  %v488_v37 = vmul.f32 %v484_v25, %v473_v33 }
  0xce   : > { %v396_v10 = vrot.slane %v387_v62, %v1362_v7  ;;  %v348_v15 = vrot.slane %v343_v4, %v1360_v6 }
  0xcf   : > { %v525_v38 = vrot.slane %v443_v34, 4  ;;  %v526_v39 = vrot.slane %v444_v35, 4  ;;  %v448_v40 = vpop.permute.xlu1 %447  ;;  %v446_v41 = vpop.permute.xlu0 %445  ;;  %v531_v42 = vrot.slane %v487_v36, 4  ;;  %v532_v43 = vrot.slane %v488_v37, 4  ;;  %v554_v35 = vld [vmem:[#allocation6] sm:$0xf] }
  0xd0   : > { %v450_v44 = vsel %vm449_vm3, %v446_v41, %v448_v40  ;;  %v451_v45 = vsel %vm449_vm3, %v448_v40, %v446_v41 }
  0xd1   : > { %v540_v46 = vsel %vm535_vm4, %v1336_v0, %v525_v38  ;;  %v541_v47 = vsel %vm535_vm4, %v1342_v1, %v526_v39  ;;  %v465_v48 = vmul.f32 %v458_v28, %v450_v44  ;;  %v466_v49 = vmul.f32 %v462_v29, %v451_v45 }
  0xd2   : > { %v564_v51 = vld [vmem:[#allocation2 + $0x38] sm:$0xf]  ;;  %v563_v52 = vld [vmem:[#allocation2 + $0x40] sm:$0xf] }
  0xd3   : > { %v542_v53 = vsel %vm535_vm4, %v465_v48, %v531_v42  ;;  %v543_v54 = vsel %vm535_vm4, %v466_v49, %v532_v43  ;;  %884 = vmatprep.subr.msk.mxu0 %vm535_vm4, %v564_v51  ;;  %v404_v55 = vpop.permute.xlu1 %403  ;;  %v402_v56 = vpop.permute.xlu0 %401 }
  0xd4   : > { %885 = vmatpush1.msk.msra.mxu0 %vm535_vm4, %v563_v52  ;;  %v406_v59 = vsel %vm405_vm5, %v402_v56, %v404_v55  ;;  %v407_v60 = vsel %vm405_vm5, %v404_v55, %v402_v56 }
  0xd5   : > { %600 = vmatprep.subr.mxu0 %v543_v54  ;;  %v421_v1 = vmul.f32 %v414_v57, %v407_v60  ;;  %v422_v2 = vmul.f32 %v418_v58, %v406_v59 }
  0xd6   : > { %601 = vmatpush1.msra.mxu0 %v542_v53 }
  0xd7   : > { %v360_v63 = vpop.permute.xlu1 %359  ;;  %v358_v0 = vpop.permute.xlu0 %357  ;;  %602 = vmatprep.subr.mxu0 %v541_v47  ;;  %v519_v17 = vrot.slane %v421_v1, 4  ;;  %v520_v18 = vrot.slane %v422_v2, 4 }
  0xd8   : > { %603 = vmatpush1.msra.mxu0 %v540_v46  ;;  %v362_v11 = vsel %vm361_vm6, %v358_v0, %v360_v63  ;;  %v363_v12 = vsel %vm361_vm6, %v360_v63, %v358_v0 }
  0xd9   : > { %v377_v21 = vmul.f32 %v370_v3, %v363_v12  ;;  %v378_v22 = vmul.f32 %v374_v8, %v362_v11 }
  0xdb   : > { %v382_v13 = vpop.permute.xlu1 %381  ;;  %v380_v14 = vpop.permute.xlu0 %379  ;;  %v513_v7 = vrot.slane %v377_v21, 4  ;;  %v514_v30 = vrot.slane %v378_v22, 4 }
  0xdc   : > { %v384_v19 = vsel %vm383_vm7, %v380_v14, %v382_v13  ;;  %v385_v20 = vsel %vm383_vm7, %v382_v13, %v380_v14 }
  0xdd   : > { %v399_v23 = vmul.f32 %v392_v9, %v385_v20  ;;  %v400_v24 = vmul.f32 %v396_v10, %v384_v19 }
  0xdf   : > { %v538_v25 = vsel %vm535_vm4, %v399_v23, %v519_v17  ;;  %v539_v26 = vsel %vm535_vm4, %v400_v24, %v520_v18  ;;  %v337_v27 = vpop.permute.xlu1 %336  ;;  %v335_v28 = vpop.permute.xlu0 %334 }
  0xe0   : > { %v341_v29 = vsel %vm340_vm8, %v335_v28, %v337_v27  ;;  %v342_v6 = vsel %vm340_vm8, %v337_v27, %v335_v28  ;;  %604 = vmatprep.subr.mxu0 %v539_v26 }
  0xe1   : > { %v355_v31 = vmul.f32 %v348_v15, %v342_v6  ;;  %v356_v32 = vmul.f32 %v352_v16, %v341_v29  ;;  %605 = vmatpush1.msra.mxu0 %v538_v25 }
  0xe3   : > { %v536_v33 = vsel %vm535_vm4, %v355_v31, %v513_v7  ;;  %v537_v34 = vsel %vm535_vm4, %v356_v32, %v514_v30 }
  0xe4   : > { %606 = vmatprep.subr.mxu0 %v537_v34 }
  0xe5   : > { %607 = vmatpush1.msra.mxu0 %v536_v33 }
  0xe6   : > { %886 = vmatmul.mubr.msk.f32.vlgmr.msra.gmra.mxu0 %vm565_vm9, %v554_v35 }
 0x1a6   : > { %v642_v36 = vpop.f32.mrf.mxu0 }
 0x1a7   : > { %v659_v5 = vmul.f32 %v642_v36, %v642_v36  ;;  %v652_v41 = vsel %vm535_vm4, %v642_v36, 0.0 }
 0x1a8   : > { %v644_v37 = vpop.f32.mrf.mxu0 }
 0x1a9   : > { %v649_v38 = vcombine.low %v642_v36, %v644_v37  ;;  %v653_v39 = vsel %vm535_vm4, %v644_v37, 0.0  ;;  %v660_v40 = vmul.f32 %v644_v37, %v644_v37  ;;  %v661_v43 = vsel %vm535_vm4, %v659_v5, 0.0 }
 0x1aa   : > { %v654_v42 = vadd.f32 %v653_v39, %v652_v41 }
 0x1ab   : > { %v662_v44 = vsel %vm535_vm4, %v660_v40, 0.0  ;;  %651 = vst [vmem:[%s293_s24] sm:$0xff] %v649_v38 }
 0x1ac   : > { %655 = vadd.xlane.f32.xlu0 %v654_v42  ;;  %v663_v45 = vadd.f32 %v662_v44, %v661_v43 }
 0x1ae   : > { %664 = vadd.xlane.f32.xlu1 %v663_v45 }
 0x1af   : > { %1082 = shalt.err (!%p1079_p0)
}
 0x1b0   : > { %s1083_s15 = scalar_lea.hbm %s696_s13, 128  ;;  %s1087_s17 = scalar_lea.hbm %s1473_s3, 256 }
 0x1b1   : > { %p1084_p1 = scmp.ne.s32.totalorder %s696_s13, %s1083_s15  ;;  %p1088_p6 = scmp.lt.s32.totalorder %s696_s13, %s1473_s3 }
 0x1b2   : > { %p1089_p8 = scmp.lt.s32.totalorder %s1087_s17, %s1083_s15 }
 0x1b3   : > { %p1085_p2 = pnand %p1084_p1, %p1295_p12 }
 0x1b4   : > { %p1090_p9 = por %p1089_p8, %p1088_p6 }
 0x1b5   : > { %p1086_p4 = pneg %p1085_p2 }
 0x1b7   : > { %p1091_p3 = pnand %p1090_p9, %p1086_p4 }
 0x1b9   : > { %1094 = shalt.err (!%p1091_p3)
}
 0x1ba   : > { %904 = dma.vmem_to_hbm [thread:$0]  (%p1295_p12), %s699_s1, 128, %s696_s13, %s668_s30   ;;  %vm657_vm10 = vcmask 3072  }
 0x1bb   : > { %p312_p11 = scmp.lt.s32.totalorder %s1145_s21, 1 }
 0x1bd   : > { %s1504_s21 = smov (!%p312_p11, %s1145_s21), 1 }
 0x1be   : > { %s882_s8 = sshll.u32 %s1504_s21, 2 }
 0x1bf   : > { %s318_s14 = scalar_lea.vmem %s1474_s4, %s882_s8  ;;  %s325_s9 = scalar_lea.vmem %s1475_s5, %s882_s8 }
 0x235   : > { %v656_v46 = vpop.xlane.xlu0 %655 }
 0x236   : > { %658 = vst.msk [vmem:[%s318_s14] sm:$0xf] %vm657_vm10, %v656_v46 }
 0x237   : > { %v665_v47 = vpop.xlane.xlu1 %664 }
 0x238   : > { %666 = vst.msk [vmem:[%s325_s9] sm:$0xf] %vm657_vm10, %v665_v47 }
 0x239 PF: > { %s716_s7 = sand.u32 1, %s1133_s18   ;;  %p1494_p12 = scmp.ne.s32.totalorder %s1484_s29, 0 }
 0x23a   : > { %p1495_p5 = scmp.ge.s32.totalorder %s1153_s23, 2  ;;  %s717_s21 = scalar_lea.sflag [#allocation5], %s716_s7 }
 0x23c   : > { %p918_p7 = pnand %p1495_p5, %p1494_p12 }
 0x23e   : > { %p919_p10 = pneg %p918_p7 }
 0x240   : > { %1128 = dma.done.wait (%p919_p10), %s717_s21, 128  }
 0x241   : > { %1130 = vsyncadd (%p919_p10), %s717_s21, 4294967168  ;;  %s23_s23 = sadd.s32 1, %s1153_s23   ;;  %s1496_s18 = smov %s1137_s19 }
 0x242   : > { %p20_p13 = scmp.ge.s32.totalorder %s23_s23, 4   ;;  %s1497_s19 = smov %s1141_s20 }
 0x243   : > { %s1498_s20 = smov %s1304_s12  ;;  %s1499_s21 = smov %s1149_s22 }
 0x244   : > { %s1500_s22 = smov %s1502_s25  ;;  %22 = sbr.rel (!%p20_p13) target bundleno = 9 (0x9), region = 121 }
 0x249   :  { %742 = vsyncpa [#allocation4], 1 }
 0x24a   :  { %744 = vsyncpa [#allocation4 + $0x1], 1 }
 0x24b   :  { %745 = vsyncpa [#allocation7], 1 }
 0x24c   :  { %746 = vsyncpa [#allocation5], 1 }
 0x24d   :  { %748 = vsyncpa [#allocation5 + $0x1], 1 }

</bundles_post_ra>
